<compile_context>
chip_gen: v7x
topology: tpu7x:2x2x1
jax: 0.10.0
libtpu: 0.0.40
codegen_flags: <defaults>
</compile_context>

<pallas_src>
import jax
import jax.numpy as jnp
from jax.experimental import pallas as pl
from jax.experimental.pallas import tpu as pltpu

# First layer runs on the VPU (unrolled over input channels) when C is at most
# this; otherwise it falls back to an MXU matmul.
_VPU_LAYER1_MAX_C = 8


def _invariant_kernel(x_ref,
                      w1_ref, b1_ref, w2_ref, b2_ref,
                      w3_ref, b3_ref, w4_ref, b4_ref,
                      o_ref):
    TBN, C = x_ref.shape                     # flattened (batch_tile * N, in_chn)
    TB, DP = o_ref.shape                     # (batch_tile, lane-padded dim)
    N = TBN // TB                            # set size (static)

    x2d = x_ref[...]                         # (TBN, C) f32 — flattened in wrapper

    # ---- s1 layer 1 ------------------------------------------------------
    if C <= _VPU_LAYER1_MAX_C:
        # K = C is tiny: a (TBN, C)@(C, DP) matmul wastes ~TBN/8 MXU pushes on
        # mostly-zero K. Do it on the VPU instead: unrolled broadcast-MAC over
        # the C input channels (MXU stays free for the K=128 layers).
        w1 = w1_ref[...]                                     # (C, DP) f32
        acc = x2d[:, 0:1] * w1[0:1, :] + b1_ref[...]         # (TBN, DP) f32
        for c in range(1, C):                                # static unroll
            acc = acc + x2d[:, c:c + 1] * w1[c:c + 1, :]
    else:
        acc = jnp.dot(x2d.astype(w1_ref.dtype), w1_ref[...],
                      preferred_element_type=jnp.float32) + b1_ref[...]
    h = jnp.maximum(acc, 0.0)
    h = h.astype(w2_ref.dtype)               # single downcast of the big tensor

    # ---- s1 layer 2: (TBN, DP) @ (DP, DP) on the MXU, f32 accumulation ----
    h = jnp.dot(h, w2_ref[...], preferred_element_type=jnp.float32) + b2_ref[...]
    h = jnp.maximum(h, 0.0)                  # (TBN, DP) f32

    # ---- invariant pooling: SUM over N (exact 1/N folded into W3) ---------
    pooled = jnp.sum(h.reshape(TB, N, DP), axis=1)           # (TB, DP) f32

    # ---- s2: Linear -> ReLU -> Linear --------------------------------------
    h2 = jnp.dot(pooled.astype(w3_ref.dtype), w3_ref[...],
                 preferred_element_type=jnp.float32) + b3_ref[...]
    h2 = jnp.maximum(h2, 0.0)
    out = jnp.dot(h2.astype(w4_ref.dtype), w4_ref[...],
                  preferred_element_type=jnp.float32) + b4_ref[...]

    o_ref[...] = out.astype(o_ref.dtype)     # lane-dense (TB, DP) store


def prepare_params(params, n_set, use_bf16=True):
    """One-time weight preprocessing: lane padding, 1/N fold, dtype casts.

    Hoisted out of the forward so per-call wrapper work is just the x pad/reshape.
    """
    C, D = params['w1'].shape
    DP = pl.cdiv(D, 128) * 128               # lane-dense padded hidden/out dim
    cdt = jnp.bfloat16 if use_bf16 else jnp.float32

    def pad_w(w, rows, cols, dtype):
        return jnp.pad(w, ((0, rows - w.shape[0]), (0, cols - w.shape[1]))).astype(dtype)

    def pad_b(b, cols):
        # biases stay f32: they are added to the f32 accumulator
        return jnp.pad(b, ((0, 0), (0, cols - b.shape[1]))).astype(jnp.float32)

    # W1 stays f32 when layer 1 runs on the VPU; bf16 only if it goes to the MXU.
    w1_dtype = jnp.float32 if C <= _VPU_LAYER1_MAX_C else cdt
    prepared = dict(
        w1=pad_w(params['w1'], C, DP, w1_dtype),
        b1=pad_b(params['b1'], DP),
        w2=pad_w(params['w2'], DP, DP, cdt),
        b2=pad_b(params['b2'], DP),
        # fold the exact 1/N of the mean pool into W3: mean(h)@W3 == sum(h)@(W3/N)
        w3=pad_w(params['w3'] * (1.0 / n_set), DP, DP, cdt),
        b3=pad_b(params['b3'], DP),
        w4=pad_w(params['w4'], DP, DP, cdt),
        b4=pad_b(params['b4'], DP),
    )
    meta = dict(in_chn=C, inv_dim=D, padded_dim=DP, n_set=n_set)
    return prepared, meta


def invariant_forward(x, prepared, meta, *, tile_b=None):
    """x: (B, N, C) float32 -> (B, inv_dim) float32."""
    B, N, C = x.shape
    assert N == meta['n_set'] and C == meta['in_chn']
    D, DP = meta['inv_dim'], meta['padded_dim']

    # ---- batch tiling ------------------------------------------------------
    # Sublane-aligned tile; default guarantees >= 2 grid tiles when B >= 16 so
    # both v7x TensorCores get work, and caps TB so the per-step live set
    # (~3 copies of the (TB*N, DP) intermediate + double-buffered I/O) stays
    # well inside every generation's VMEM (v5e 16 MiB scoped, v7x 64 MiB phys).
    if tile_b is None:
        tile_b = B // 2 if B >= 16 else B
        tile_b = min(tile_b, 1024)
    TB = max(8, pl.cdiv(min(tile_b, B), 8) * 8)
    B_pad = pl.cdiv(B, TB) * TB
    TBN = TB * N

    # ---- wrapper-side flatten: contiguous HBM reshape is free --------------
    x_p = x if B_pad == B else jnp.pad(x, ((0, B_pad - B), (0, 0), (0, 0)))
    x2d = x_p.reshape(B_pad * N, C).astype(jnp.float32)

    grid = (B_pad // TB,)

    # per-step VMEM estimate -> vmem_limit_bytes (2x headroom, capped < 64 MiB)
    wbytes = prepared['w2'].dtype.itemsize
    est = (2 * TBN * C * 4                       # x tile, double-buffered, f32
           + 2 * TB * DP * 4                     # out tile, double-buffered, f32
           + 2 * ((C + 3 * DP) * DP * wbytes + 4 * DP * 4)   # weights + biases
           + 3 * TBN * DP * 4)                   # h / h2 intermediates
    vmem_limit = int(min(max(32 << 20, 2 * est), 56 << 20))

    out = pl.pallas_call(
        _invariant_kernel,
        out_shape=jax.ShapeDtypeStruct((B_pad, DP), jnp.float32),
        grid=grid,
        in_specs=[
            # x: 2-D tile, pipelined over the batch grid
            pl.BlockSpec((TBN, C), lambda i: (i, 0)),
            # weights / biases: grid-resident (same block index every step)
            pl.BlockSpec((C, DP), lambda i: (0, 0)),
            pl.BlockSpec((1, DP), lambda i: (0, 0)),
            pl.BlockSpec((DP, DP), lambda i: (0, 0)),
            pl.BlockSpec((1, DP), lambda i: (0, 0)),
            pl.BlockSpec((DP, DP), lambda i: (0, 0)),
            pl.BlockSpec((1, DP), lambda i: (0, 0)),
            pl.BlockSpec((DP, DP), lambda i: (0, 0)),
            pl.BlockSpec((1, DP), lambda i: (0, 0)),
        ],
        out_specs=pl.BlockSpec((TB, DP), lambda i: (i, 0)),
        compiler_params=pltpu.CompilerParams(
            dimension_semantics=("parallel",),    # megacore split over batch tiles
            vmem_limit_bytes=vmem_limit),
    )(x2d, prepared['w1'], prepared['b1'], prepared['w2'], prepared['b2'],
      prepared['w3'], prepared['b3'], prepared['w4'], prepared['b4'])

    # Slice padded batch rows and padded lanes back to the module's output shape.
    # (For very large B a caller may prefer to consume the padded slab directly.)
    return out[:B, :D]


def init_params(key, in_chn, inv_dim=64):
    """Deterministic init matching nn.Linear default: U(-1/sqrt(fan_in), 1/sqrt(fan_in))."""
    ks = jax.random.split(key, 8)

    def lin(kw, kb, fan_in, fan_out):
        bound = 1.0 / jnp.sqrt(fan_in)
        w = jax.random.uniform(kw, (fan_in, fan_out), jnp.float32, -bound, bound)
        b = jax.random.uniform(kb, (1, fan_out), jnp.float32, -bound, bound)
        return w, b

    w1, b1 = lin(ks[0], ks[1], in_chn, inv_dim)
    w2, b2 = lin(ks[2], ks[3], inv_dim, inv_dim)
    w3, b3 = lin(ks[4], ks[5], inv_dim, inv_dim)
    w4, b4 = lin(ks[6], ks[7], inv_dim, inv_dim)
    return dict(w1=w1, b1=b1, w2=w2, b2=b2, w3=w3, b3=b3, w4=w4, b4=b4)


def reference_forward(x, p):
    """Pure-JAX reference of the PyTorch module (full f32 precision)."""
    hp = 'highest'
    h = jnp.maximum(jnp.einsum('bnc,cd->bnd', x, p['w1'], precision=hp) + p['b1'], 0.0)
    h = jnp.maximum(jnp.einsum('bnd,de->bne', h, p['w2'], precision=hp) + p['b2'], 0.0)
    xr = jnp.mean(h, axis=1)
    h2 = jnp.maximum(jnp.dot(xr, p['w3'], precision=hp) + p['b3'], 0.0)
    return jnp.dot(h2, p['w4'], precision=hp) + p['b4']


if __name__ == "__main__":
    B, N, C, D = 2, 8, 4, 64   # batch, set size, x_dim (in_chn), inv_dim

    key = jax.random.PRNGKey(0)
    kx, kp = jax.random.split(key)
    x = jax.random.normal(kx, (B, N, C), jnp.float32)
    params = init_params(kp, C, D)

    ref = reference_forward(x, params)

    # exact-precision path (f32 matmul operands) -- structural correctness
    prep_f32, meta_f32 = prepare_params(params, N, use_bf16=False)
    out_f32 = jax.block_until_ready(invariant_forward(x, prep_f32, meta_f32))
    assert out_f32.shape == (B, D), out_f32.shape
    assert jnp.allclose(out_f32, ref, atol=1e-4, rtol=1e-4), "f32 kernel mismatch vs reference"

    # performance path: bf16 MXU operands, f32 accumulation
    prep_bf16, meta_bf16 = prepare_params(params, N, use_bf16=True)
    out_bf16 = jax.block_until_ready(invariant_forward(x, prep_bf16, meta_bf16))
    assert out_bf16.shape == (B, D), out_bf16.shape
    assert jnp.allclose(out_bf16, ref, atol=5e-2, rtol=5e-2), "bf16 kernel mismatch vs reference"

    print("KERNEL_OK")
</pallas_src>

<mosaic_0001>
module attributes {stable_mosaic.version = 11 : i64} {
  func.func @_invariant_kernel(%arg0: i32, %arg1: memref<64x4xf32, #tpu.memory_space<vmem>>, %arg2: memref<4x128xf32, #tpu.memory_space<vmem>>, %arg3: memref<1x128xf32, #tpu.memory_space<vmem>>, %arg4: memref<128x128xf32, #tpu.memory_space<vmem>>, %arg5: memref<1x128xf32, #tpu.memory_space<vmem>>, %arg6: memref<128x128xf32, #tpu.memory_space<vmem>>, %arg7: memref<1x128xf32, #tpu.memory_space<vmem>>, %arg8: memref<128x128xf32, #tpu.memory_space<vmem>>, %arg9: memref<1x128xf32, #tpu.memory_space<vmem>>, %arg10: memref<8x128xf32, #tpu.memory_space<vmem>>) attributes {dimension_semantics = [#tpu.dimension_semantics<parallel>], iteration_bounds = array<i64: 1>, scalar_prefetch = 0 : i64, scratch_operands = 0 : i64, tpu.core_type = #tpu.core_type<tc>, window_params = [{transform_indices = @transform_0, window_bounds = array<i64: 64, 4>}, {pipeline_mode = #tpu.pipeline_mode<synchronous>, transform_indices = @transform_1, window_bounds = array<i64: 4, 128>}, {pipeline_mode = #tpu.pipeline_mode<synchronous>, transform_indices = @transform_2, window_bounds = array<i64: 1, 128>}, {pipeline_mode = #tpu.pipeline_mode<synchronous>, transform_indices = @transform_3, window_bounds = array<i64: 128, 128>}, {pipeline_mode = #tpu.pipeline_mode<synchronous>, transform_indices = @transform_4, window_bounds = array<i64: 1, 128>}, {pipeline_mode = #tpu.pipeline_mode<synchronous>, transform_indices = @transform_5, window_bounds = array<i64: 128, 128>}, {pipeline_mode = #tpu.pipeline_mode<synchronous>, transform_indices = @transform_6, window_bounds = array<i64: 1, 128>}, {pipeline_mode = #tpu.pipeline_mode<synchronous>, transform_indices = @transform_7, window_bounds = array<i64: 128, 128>}, {pipeline_mode = #tpu.pipeline_mode<synchronous>, transform_indices = @transform_8, window_bounds = array<i64: 1, 128>}, {transform_indices = @transform_9, window_bounds = array<i64: 8, 128>}]} {
    %c0 = arith.constant 0 : index
    %c0_0 = arith.constant 0 : index
    %0 = vector.load %arg1[%c0, %c0_0] : memref<64x4xf32, #tpu.memory_space<vmem>>, vector<64x4xf32>
    %c0_1 = arith.constant 0 : index
    %c0_2 = arith.constant 0 : index
    %1 = vector.load %arg2[%c0_1, %c0_2] : memref<4x128xf32, #tpu.memory_space<vmem>>, vector<4x128xf32>
    %2 = vector.extract_strided_slice %0 {offsets = [0, 0], sizes = [64, 1], strides = [1, 1]} : vector<64x4xf32> to vector<64x1xf32>
    %3 = vector.extract_strided_slice %1 {offsets = [0, 0], sizes = [1, 128], strides = [1, 1]} : vector<4x128xf32> to vector<1x128xf32>
    %4 = vector.broadcast %2 : vector<64x1xf32> to vector<64x128xf32>
    %5 = vector.broadcast %3 : vector<1x128xf32> to vector<64x128xf32>
    %6 = arith.mulf %4, %5 : vector<64x128xf32>
    %c0_3 = arith.constant 0 : index
    %c0_4 = arith.constant 0 : index
    %7 = vector.load %arg3[%c0_3, %c0_4] : memref<1x128xf32, #tpu.memory_space<vmem>>, vector<1x128xf32>
    %8 = vector.broadcast %7 : vector<1x128xf32> to vector<64x128xf32>
    %9 = arith.addf %6, %8 : vector<64x128xf32>
    %10 = vector.extract_strided_slice %0 {offsets = [0, 1], sizes = [64, 1], strides = [1, 1]} : vector<64x4xf32> to vector<64x1xf32>
    %11 = vector.extract_strided_slice %1 {offsets = [1, 0], sizes = [1, 128], strides = [1, 1]} : vector<4x128xf32> to vector<1x128xf32>
    %12 = vector.broadcast %10 : vector<64x1xf32> to vector<64x128xf32>
    %13 = vector.broadcast %11 : vector<1x128xf32> to vector<64x128xf32>
    %14 = arith.mulf %12, %13 : vector<64x128xf32>
    %15 = arith.addf %9, %14 : vector<64x128xf32>
    %16 = vector.extract_strided_slice %0 {offsets = [0, 2], sizes = [64, 1], strides = [1, 1]} : vector<64x4xf32> to vector<64x1xf32>
    %17 = vector.extract_strided_slice %1 {offsets = [2, 0], sizes = [1, 128], strides = [1, 1]} : vector<4x128xf32> to vector<1x128xf32>
    %18 = vector.broadcast %16 : vector<64x1xf32> to vector<64x128xf32>
    %19 = vector.broadcast %17 : vector<1x128xf32> to vector<64x128xf32>
    %20 = arith.mulf %18, %19 : vector<64x128xf32>
    %21 = arith.addf %15, %20 : vector<64x128xf32>
    %22 = vector.extract_strided_slice %0 {offsets = [0, 3], sizes = [64, 1], strides = [1, 1]} : vector<64x4xf32> to vector<64x1xf32>
    %23 = vector.extract_strided_slice %1 {offsets = [3, 0], sizes = [1, 128], strides = [1, 1]} : vector<4x128xf32> to vector<1x128xf32>
    %24 = vector.broadcast %22 : vector<64x1xf32> to vector<64x128xf32>
    %25 = vector.broadcast %23 : vector<1x128xf32> to vector<64x128xf32>
    %26 = arith.mulf %24, %25 : vector<64x128xf32>
    %27 = arith.addf %21, %26 : vector<64x128xf32>
    %cst = arith.constant 0.000000e+00 : f32
    %28 = vector.broadcast %cst : f32 to vector<64x128xf32>
    %29 = arith.maximumf %27, %28 : vector<64x128xf32>
    %c0_5 = arith.constant 0 : index
    %c0_6 = arith.constant 0 : index
    %30 = vector.load %arg4[%c0_5, %c0_6] : memref<128x128xf32, #tpu.memory_space<vmem>>, vector<128x128xf32>
    %cst_7 = arith.constant dense<0.000000e+00> : vector<64x128xf32>
    %31 = tpu.matmul %29, %30, %cst_7 {dimension_numbers = #tpu.dot_dimension_numbers<[1], [0], [0], [1], [0, 0, 1, 1], [], []>} : vector<64x128xf32>, vector<128x128xf32>, vector<64x128xf32> -> vector<64x128xf32>
    %c0_8 = arith.constant 0 : index
    %c0_9 = arith.constant 0 : index
    %32 = vector.load %arg5[%c0_8, %c0_9] : memref<1x128xf32, #tpu.memory_space<vmem>>, vector<1x128xf32>
    %33 = vector.broadcast %32 : vector<1x128xf32> to vector<64x128xf32>
    %34 = arith.addf %31, %33 : vector<64x128xf32>
    %cst_10 = arith.constant 0.000000e+00 : f32
    %35 = vector.broadcast %cst_10 : f32 to vector<64x128xf32>
    %36 = arith.maximumf %34, %35 : vector<64x128xf32>
    %37 = vector.shape_cast %36 : vector<64x128xf32> to vector<8x8x128xf32>
    %cst_11 = arith.constant dense<0.000000e+00> : vector<8x128xf32>
    %38 = vector.multi_reduction <add>, %37, %cst_11 [1] : vector<8x8x128xf32> to vector<8x128xf32>
    %c0_12 = arith.constant 0 : index
    %c0_13 = arith.constant 0 : index
    %39 = vector.load %arg6[%c0_12, %c0_13] : memref<128x128xf32, #tpu.memory_space<vmem>>, vector<128x128xf32>
    %cst_14 = arith.constant dense<0.000000e+00> : vector<8x128xf32>
    %40 = tpu.matmul %38, %39, %cst_14 {dimension_numbers = #tpu.dot_dimension_numbers<[1], [0], [0], [1], [0, 0, 1, 1], [], []>} : vector<8x128xf32>, vector<128x128xf32>, vector<8x128xf32> -> vector<8x128xf32>
    %c0_15 = arith.constant 0 : index
    %c0_16 = arith.constant 0 : index
    %41 = vector.load %arg7[%c0_15, %c0_16] : memref<1x128xf32, #tpu.memory_space<vmem>>, vector<1x128xf32>
    %42 = vector.broadcast %41 : vector<1x128xf32> to vector<8x128xf32>
    %43 = arith.addf %40, %42 : vector<8x128xf32>
    %cst_17 = arith.constant 0.000000e+00 : f32
    %44 = vector.broadcast %cst_17 : f32 to vector<8x128xf32>
    %45 = arith.maximumf %43, %44 : vector<8x128xf32>
    %c0_18 = arith.constant 0 : index
    %c0_19 = arith.constant 0 : index
    %46 = vector.load %arg8[%c0_18, %c0_19] : memref<128x128xf32, #tpu.memory_space<vmem>>, vector<128x128xf32>
    %cst_20 = arith.constant dense<0.000000e+00> : vector<8x128xf32>
    %47 = tpu.matmul %45, %46, %cst_20 {dimension_numbers = #tpu.dot_dimension_numbers<[1], [0], [0], [1], [0, 0, 1, 1], [], []>} : vector<8x128xf32>, vector<128x128xf32>, vector<8x128xf32> -> vector<8x128xf32>
    %c0_21 = arith.constant 0 : index
    %c0_22 = arith.constant 0 : index
    %48 = vector.load %arg9[%c0_21, %c0_22] : memref<1x128xf32, #tpu.memory_space<vmem>>, vector<1x128xf32>
    %49 = vector.broadcast %48 : vector<1x128xf32> to vector<8x128xf32>
    %50 = arith.addf %47, %49 : vector<8x128xf32>
    %c0_23 = arith.constant 0 : index
    %c0_24 = arith.constant 0 : index
    %51 = vector.load %arg10[%c0_23, %c0_24] : memref<8x128xf32, #tpu.memory_space<vmem>>, vector<8x128xf32>
    tpu.vector_store %arg10[%c0_23, %c0_24], %50 {strides = array<i32>} : memref<8x128xf32, #tpu.memory_space<vmem>>, vector<8x128xf32>,
    return
  }
  func.func @transform_0(%arg0: i32) -> (i32, i32) {
    %c0_i32 = arith.constant 0 : i32
    %c0_i32_0 = arith.constant 0 : i32
    return %arg0, %c0_i32 : i32, i32
  }
  func.func @transform_1(%arg0: i32) -> (i32, i32) {
    %c0_i32 = arith.constant 0 : i32
    %c0_i32_0 = arith.constant 0 : i32
    %c0_i32_1 = arith.constant 0 : i32
    return %c0_i32, %c0_i32_0 : i32, i32
  }
  func.func @transform_2(%arg0: i32) -> (i32, i32) {
    %c0_i32 = arith.constant 0 : i32
    %c0_i32_0 = arith.constant 0 : i32
    %c0_i32_1 = arith.constant 0 : i32
    return %c0_i32, %c0_i32_0 : i32, i32
  }
  func.func @transform_3(%arg0: i32) -> (i32, i32) {
    %c0_i32 = arith.constant 0 : i32
    %c0_i32_0 = arith.constant 0 : i32
    %c0_i32_1 = arith.constant 0 : i32
    return %c0_i32, %c0_i32_0 : i32, i32
  }
  func.func @transform_4(%arg0: i32) -> (i32, i32) {
    %c0_i32 = arith.constant 0 : i32
    %c0_i32_0 = arith.constant 0 : i32
    %c0_i32_1 = arith.constant 0 : i32
    return %c0_i32, %c0_i32_0 : i32, i32
  }
  func.func @transform_5(%arg0: i32) -> (i32, i32) {
    %c0_i32 = arith.constant 0 : i32
    %c0_i32_0 = arith.constant 0 : i32
    %c0_i32_1 = arith.constant 0 : i32
    return %c0_i32, %c0_i32_0 : i32, i32
  }
  func.func @transform_6(%arg0: i32) -> (i32, i32) {
    %c0_i32 = arith.constant 0 : i32
    %c0_i32_0 = arith.constant 0 : i32
    %c0_i32_1 = arith.constant 0 : i32
    return %c0_i32, %c0_i32_0 : i32, i32
  }
  func.func @transform_7(%arg0: i32) -> (i32, i32) {
    %c0_i32 = arith.constant 0 : i32
    %c0_i32_0 = arith.constant 0 : i32
    %c0_i32_1 = arith.constant 0 : i32
    return %c0_i32, %c0_i32_0 : i32, i32
  }
  func.func @transform_8(%arg0: i32) -> (i32, i32) {
    %c0_i32 = arith.constant 0 : i32
    %c0_i32_0 = arith.constant 0 : i32
    %c0_i32_1 = arith.constant 0 : i32
    return %c0_i32, %c0_i32_0 : i32, i32
  }
  func.func @transform_9(%arg0: i32) -> (i32, i32) {
    %c0_i32 = arith.constant 0 : i32
    %c0_i32_0 = arith.constant 0 : i32
    return %arg0, %c0_i32 : i32, i32
  }
}

</mosaic_0001>

<bundles_post_ra>
// kernel: tpu_custom_call.1
= control target key start
LH: loop header
LB: loop body
LE: loop exit
PB: predicated region body
PF: predicated region fallthrough
CT: control target
= control target key end

     0   :  { %14 = vsyncpa [#allocation3], 0  ;;  %s1374_s0 = inlined_call_operand.vmem [shape: f32[64,4], index: 0, kind: input, shape index: {}]   ;;  %s1375_s1 = inlined_call_operand.vmem [shape: f32[4,128], index: 1, kind: input, shape index: {}]   ;;  %s1376_s2 = inlined_call_operand.vmem [shape: f32[1,128], index: 2, kind: input, shape index: {}]   ;;  %s1377_s3 = inlined_call_operand.hbm [shape: f32[128,128], index: 3, kind: input, shape index: {}]   ;;  %s1378_s4 = inlined_call_operand.vmem [shape: f32[1,128], index: 4, kind: input, shape index: {}]   ;;  %s1379_s5 = inlined_call_operand.hbm [shape: f32[128,128], index: 5, kind: input, shape index: {}]   ;;  %s1380_s6 = inlined_call_operand.vmem [shape: f32[1,128], index: 6, kind: input, shape index: {}]   ;;  %s1381_s7 = inlined_call_operand.hbm [shape: f32[128,128], index: 7, kind: input, shape index: {}]   ;;  %s1382_s8 = inlined_call_operand.vmem [shape: f32[1,128], index: 8, kind: input, shape index: {}]   ;;  %s1383_s9 = inlined_call_operand.hbm [shape: f32[8,128], index: 9, kind: output, shape index: {}]  }
   0x1   :  { %15 = vsyncpa [#allocation6], 0 }
   0x2   :  { %16 = vsyncpa [#allocation4], 0  ;;  %s1107_s30 = smov [#allocation5]   ;;  %s1108_s11 = smov [#allocation2]  }
   0x3   :  { %s42_s10 = sshll.u32 %s1107_s30, 4  ;;  %s28_s12 = sshll.u32 %s1108_s11, 4  ;;  %s43_s10 = int_to_ptr.vmem [resolvable:$true] %s42_s10  ;;  %s1170_s12 = int_to_ptr.vmem [resolvable:$true] %s28_s12 }
   0x4   :  { %s1013_s15 = scalar_lea.hbm %s1379_s5, 2048 }
   0x5   :  { %p1014_p0 = scmp.ne.s32.totalorder %s1379_s5, %s1013_s15  ;;  %p1017_p1 = scmp.lt.u32.totalorder %s1013_s15, %s1379_s5 }
   0x7   :  { %p1019_p2 = pnand %p1017_p1, %p1014_p0 }
   0x9   :  { %1022 = shalt.err (!%p1019_p2)
}
   0xa   :  { %s1023_s20 = scalar_lea.vmem %s43_s10, 2048  ;;  %p1028_p4 = scmp.lt.s32.totalorder %s43_s10, %s43_s10 }
   0xb   :  { %p1024_p3 = scmp.ne.s32.totalorder %s43_s10, %s1023_s20  ;;  %p1029_p5 = scmp.lt.s32.totalorder %s1023_s20, %s1023_s20 }
   0xd   :  { %p1030_p6 = por %p1029_p5, %p1028_p4 }
   0xf   :  { %p1031_p7 = pnand %p1030_p6, %p1024_p3 }
  0x11   :  { %1034 = shalt.err (!%p1031_p7)
}
  0x12   :  { %s1109_s21 = smov 128   ;;  %s1110_s22 = smov 8  }
  0x13   :  { %48 = dma.hbm_to_vmem [thread:$0]  %s1379_s5, 2048, %s43_s10, [#allocation6], %s1109_s21, %s1109_s21, %s1110_s22  }
  0x14   :  { %s1035_s27 = scalar_lea.hbm %s1377_s3, 2048 }
  0x15   :  { %p1036_p8 = scmp.ne.s32.totalorder %s1377_s3, %s1035_s27  ;;  %p1039_p9 = scmp.lt.u32.totalorder %s1035_s27, %s1377_s3 }
  0x17   :  { %p1041_p10 = pnand %p1039_p9, %p1036_p8 }
  0x19   :  { %1044 = shalt.err (!%p1041_p10)
}
  0x1a   :  { %s1045_s13 = scalar_lea.vmem %s1170_s12, 2048  ;;  %p1050_p12 = scmp.lt.s32.totalorder %s1170_s12, %s1170_s12 }
  0x1b   :  { %p1046_p11 = scmp.ne.s32.totalorder %s1170_s12, %s1045_s13  ;;  %p1051_p13 = scmp.lt.s32.totalorder %s1045_s13, %s1045_s13 }
  0x1d   :  { %p1052_p0 = por %p1051_p13, %p1050_p12 }
  0x1f   :  { %p1053_p1 = pnand %p1052_p0, %p1046_p11 }
  0x21   :  { %1056 = shalt.err (!%p1053_p1)
}
  0x22   :  { %34 = dma.hbm_to_vmem [thread:$0]  %s1377_s3, 2048, %s1170_s12, [#allocation3], %s1109_s21, %s1109_s21, %s1110_s22  }
  0x23   :  { %s1111_s14 = smov [#allocation7]   ;;  %s1057_s18 = scalar_lea.hbm %s1381_s7, 2048 }
  0x24   :  { %s56_s15 = sshll.u32 %s1111_s14, 4  ;;  %p1058_p2 = scmp.ne.s32.totalorder %s1381_s7, %s1057_s18  ;;  %s57_s15 = int_to_ptr.vmem [resolvable:$true] %s56_s15 }
  0x25   :  { %p1061_p3 = scmp.lt.u32.totalorder %s1057_s18, %s1381_s7 }
  0x27   :  { %p1063_p4 = pnand %p1061_p3, %p1058_p2 }
  0x29   :  { %1066 = shalt.err (!%p1063_p4)
}
  0x2a   :  { %s1067_s25 = scalar_lea.vmem %s57_s15, 2048  ;;  %p1072_p6 = scmp.lt.s32.totalorder %s57_s15, %s57_s15 }
  0x2b   :  { %p1068_p5 = scmp.ne.s32.totalorder %s57_s15, %s1067_s25  ;;  %p1073_p7 = scmp.lt.s32.totalorder %s1067_s25, %s1067_s25 }
  0x2d   :  { %p1074_p8 = por %p1073_p7, %p1072_p6 }
  0x2f   :  { %p1075_p9 = pnand %p1074_p8, %p1068_p5 }
  0x31   :  { %1078 = shalt.err (!%p1075_p9)
}
  0x32   :  { %62 = dma.hbm_to_vmem [thread:$0]  %s1381_s7, 2048, %s57_s15, [#allocation6], %s1109_s21, %s1109_s21, %s1110_s22  }
  0x33   :  { %1101 = dma.done.wait [#allocation3], 2048  }
  0x34   :  { %1102 = vsyncadd [#allocation3], 4294965248 }
  0x35   :  { %1103 = dma.done.wait [#allocation6], 4096  }
  0x36   :  { %1104 = vsyncadd [#allocation6], 4294963200  ;;  %v1112_v0 = vmov 3   ;;  %v1113_v1 = vmov 1   ;;  %v75_v2 = vld [vmem:[%s1374_s0 + $0x8] sm:$0xff]  ;;  %v74_v3 = vld [vmem:[%s1374_s0] sm:$0xff]  ;;  %v123_v36 = vlaneseq }
  0x37   :  { %998 = vset.pattern.permute.xlu0 %v1112_v0  ;;  %994 = vset.pattern.permute.xlu1 %v1113_v1  ;;  %v1233_v4 = vld [vmem:[%s1374_s0 + $0x10] sm:$0xff]  ;;  %v314_v5 = vld [vmem:[#allocation2] sm:$0xff]  ;;  %v315_v6 = vld [vmem:[#allocation2 + $0x8] sm:$0xff]  ;;  %v1114_v14 = vmov 0   ;;  %v1115_v15 = vmov 2   ;;  %vm1117_vm0 = vmmov 0  }
  0x38   :  { %259 = vperm.xlu0 %998, %v75_v2   ;;  %151 = vperm.xlu1 %994, %v74_v3   ;;  %v316_v7 = vld [vmem:[#allocation2 + $0x10] sm:$0xff]  ;;  %v317_v8 = vld [vmem:[#allocation2 + $0x18] sm:$0xff]  ;;  %v901_v9 = vpack.c.bf16 %v315_v6, %v314_v5  ;;  %v318_v11 = vld [vmem:[#allocation2 + $0x20] sm:$0xff]  ;;  %v124_v37 = vshrl.u32 %v123_v36, 7  ;;  %vm529_vm1 = vcmask 1041409   ;;  %vm531_vm2 = vcmask 1042434  }
  0x39   :  { %v905_v10 = vpack.c.bf16 %v317_v8, %v316_v7  ;;  %v319_v12 = vld [vmem:[#allocation2 + $0x28] sm:$0xff]  ;;  %v320_v16 = vld [vmem:[#allocation2 + $0x30] sm:$0xff]  ;;  %v321_v17 = vld [vmem:[#allocation2 + $0x38] sm:$0xff]  ;;  %vm533_vm3 = vcmask 1043459   ;;  %vm535_vm4 = vcmask 1044484   ;;  %vm537_vm5 = vcmask 1045509  }
  0x3a   :  { %902 = vmatprep.subr.bf16.mxu0 %v901_v9  ;;  %v909_v13 = vpack.c.bf16 %v319_v12, %v318_v11  ;;  %v913_v18 = vpack.c.bf16 %v321_v17, %v320_v16  ;;  %v322_v19 = vld [vmem:[#allocation2 + $0x40] sm:$0xff]  ;;  %v323_v20 = vld [vmem:[#allocation2 + $0x48] sm:$0xff]  ;;  %v324_v22 = vld [vmem:[#allocation2 + $0x50] sm:$0xff]  ;;  %v125_v40 = vsub.s32 0, %v124_v37  ;;  %v184_v44 = vsub.s32 1, %v124_v37  ;;  %s1119_s3 = smov [#allocation8]  }
  0x3b   :  { %904 = vmatpush3.bf16.msra.mxu0 %v901_v9  ;;  %v917_v21 = vpack.c.bf16 %v323_v20, %v322_v19  ;;  %v325_v23 = vld [vmem:[#allocation2 + $0x58] sm:$0xff]  ;;  %v326_v26 = vld [vmem:[#allocation2 + $0x60] sm:$0xff]  ;;  %v327_v27 = vld [vmem:[#allocation2 + $0x68] sm:$0xff]  ;;  %v236_v49 = vsub.s32 2, %v124_v37  ;;  %v288_v51 = vsub.s32 3, %v124_v37  ;;  %vm539_vm6 = vcmask 1046534  }
  0x3c   :  { %263 = vperm.xlu0 %998, %v1233_v4   ;;  %155 = vperm.xlu1 %994, %v75_v2   ;;  %v77_v24 = vld [vmem:[%s1374_s0 + $0x18] sm:$0xff]  ;;  %v921_v25 = vpack.c.bf16 %v325_v23, %v324_v22  ;;  %v79_v28 = vld [vmem:[%s1374_s0 + $0x28] sm:$0xff]  ;;  %v925_v29 = vpack.c.bf16 %v327_v27, %v326_v26  ;;  %v328_v30 = vld [vmem:[#allocation2 + $0x70] sm:$0xff]  ;;  %vm541_vm7 = vcmask 1047559   ;;  %s715_s12 = sshll.u32 %s1119_s3, 4  ;;  %s716_s12 = int_to_ptr.vmem [resolvable:$true] %s715_s12 }
  0x3d   :  { %906 = vmatprep.subr.bf16.mxu0 %v905_v10  ;;  %v329_v31 = vld [vmem:[#allocation2 + $0x78] sm:$0xff]  ;;  %v78_v32 = vld [vmem:[%s1374_s0 + $0x20] sm:$0xff]  ;;  %v80_v33 = vld [vmem:[%s1374_s0 + $0x30] sm:$0xff]  ;;  %s1079_s26 = scalar_lea.vmem %s716_s12, 128  ;;  %p1084_p11 = scmp.lt.s32.totalorder %s716_s12, %s716_s12 }
  0x3e   :  { %v929_v34 = vpack.c.bf16 %v329_v31, %v328_v30  ;;  %v81_v35 = vld [vmem:[%s1374_s0 + $0x38] sm:$0xff]  ;;  %v82_v43 = vld [vmem:[%s1375_s1] sm:$0xf]  ;;  %p1080_p10 = scmp.ne.s32.totalorder %s716_s12, %s1079_s26  ;;  %p1085_p12 = scmp.lt.s32.totalorder %s1079_s26, %s1079_s26 }
  0x3f   :  { %908 = vmatpush3.bf16.msra.mxu0 %v905_v10  ;;  %v1274_v45 = vrot.slane %v82_v43, %v125_v40  ;;  %v1276_v46 = vrot.slane %v82_v43, %v184_v44  ;;  %v1281_v47 = vld [vmem:[%s1376_s2] ss:$0 sm:$0xff]  ;;  %v1286_v55 = vrot.slane %v82_v43, %v236_v49  ;;  %v1288_v58 = vrot.slane %v82_v43, %v288_v51 }
  0x40   :  { %1002 = vset.pattern.permute.xlu0 %v1114_v14  ;;  %995 = vset.pattern.permute.xlu1 %v1115_v15  ;;  %p1086_p13 = por %p1085_p12, %p1084_p11 }
  0x41   :  { %85 = vperm.xlu0 %1002, %v74_v3   ;;  %203 = vperm.xlu1 %995, %v74_v3  }
  0x42   :  { %910 = vmatprep.subr.bf16.mxu0 %v909_v13  ;;  %p1087_p0 = pnand %p1086_p13, %p1080_p10 }
  0x43   :  { %912 = vmatpush3.bf16.msra.mxu0 %v909_v13 }
  0x44   :  { %914 = vmatprep.subr.bf16.mxu0 %v913_v18 }
  0x45   :  { %90 = vperm.xlu0 %1002, %v75_v2   ;;  %207 = vperm.xlu1 %995, %v75_v2  }
  0x47   :  { %916 = vmatpush3.bf16.msra.mxu0 %v913_v18 }
  0x48   :  { %918 = vmatprep.subr.bf16.mxu0 %v917_v21 }
  0x49   :  { %95 = vperm.xlu0 %1002, %v1233_v4   ;;  %996 = vset.pattern.permute.xlu1 %v1112_v0 }
  0x4a   :  { %255 = vperm.xlu1 %996, %v74_v3  }
  0x4b   :  { %920 = vmatpush3.bf16.msra.mxu0 %v917_v21 }
  0x4c   :  { %922 = vmatprep.subr.bf16.mxu0 %v921_v25 }
  0x4d   :  { %100 = vperm.xlu0 %1002, %v77_v24  }
  0x4e   :  { %997 = vset.pattern.permute.xlu1 %v1113_v1 }
  0x4f   :  { %163 = vperm.xlu1 %997, %v77_v24   ;;  %924 = vmatpush3.bf16.msra.mxu0 %v921_v25 }
  0x50   :  { %926 = vmatprep.subr.bf16.mxu0 %v925_v29 }
  0x51   :  { %110 = vperm.xlu0 %1002, %v79_v28  }
  0x53   :  { %999 = vset.pattern.permute.xlu1 %v1114_v14  ;;  %928 = vmatpush3.bf16.msra.mxu0 %v925_v29 }
  0x54   :  { %105 = vperm.xlu1 %999, %v78_v32   ;;  %930 = vmatprep.subr.bf16.mxu0 %v929_v34 }
  0x55   :  { %115 = vperm.xlu0 %1002, %v80_v33  }
  0x57   :  { %932 = vmatpush3.bf16.msra.mxu0 %v929_v34 }
  0x58   :  { %1000 = vset.pattern.permute.xlu1 %v1115_v15 }
  0x59   :  { %1004 = vset.pattern.permute.xlu0 %v1113_v1  ;;  %211 = vperm.xlu1 %1000, %v1233_v4  }
  0x5a   :  { %159 = vperm.xlu0 %1004, %v1233_v4  }
  0x5d   :  { %215 = vperm.xlu1 %1000, %v77_v24  }
  0x5e   :  { %179 = vperm.xlu0 %1004, %v81_v35  }
  0x61   :  { %1001 = vset.pattern.permute.xlu1 %v1113_v1 }
  0x62   :  { %167 = vperm.xlu1 %1001, %v78_v32   ;;  %1009 = vset.pattern.permute.xlu0 %v1115_v15 }
  0x63   :  { %223 = vperm.xlu0 %1009, %v79_v28  }
  0x66   :  { %171 = vperm.xlu1 %1001, %v79_v28  }
  0x67   :  { %231 = vperm.xlu0 %1009, %v81_v35  }
  0x6a   :  { %1003 = vset.pattern.permute.xlu1 %v1112_v0 }
  0x6b   :  { %267 = vperm.xlu1 %1003, %v77_v24   ;;  %1012 = vset.pattern.permute.xlu0 %v1112_v0 }
  0x6f   :  { %1005 = vset.pattern.permute.xlu1 %v1115_v15 }
  0x70   :  { %219 = vperm.xlu1 %1005, %v78_v32  }
  0x74   :  { %1006 = vset.pattern.permute.xlu1 %v1114_v14 }
  0x75   :  { %120 = vperm.xlu1 %1006, %v81_v35  }
  0x79   :  { %1007 = vset.pattern.permute.xlu1 %v1113_v1 }
  0x7a   :  { %175 = vperm.xlu1 %1007, %v80_v33  }
  0x7e   :  { %1008 = vset.pattern.permute.xlu1 %v1112_v0 }
  0x7f   :  { %271 = vperm.xlu1 %1008, %v78_v32  }
  0x83   :  { %275 = vperm.xlu1 %1008, %v79_v28  }
  0x87   :  { %1010 = vset.pattern.permute.xlu1 %v1115_v15 }
  0x88   :  { %227 = vperm.xlu1 %1010, %v80_v33  }
  0x8c   :  { %1011 = vset.pattern.permute.xlu1 %v1112_v0 }
  0x8d   :  { %279 = vperm.xlu1 %1011, %v80_v33  }
  0x91   :  { %283 = vperm.xlu1 %1011, %v81_v35  }
  0xb7   :  { %v152_v38 = vpop.permute.xlu1 %151  ;;  %v260_v39 = vpop.permute.xlu0 %259 }
  0xb8   :  { %v186_v54 = vmul.f32 %v1276_v46, %v152_v38  ;;  %v291_v1 = vmul.f32 %v1288_v58, %v260_v39 }
  0xbb   :  { %v156_v41 = vpop.permute.xlu1 %155  ;;  %v264_v42 = vpop.permute.xlu0 %263 }
  0xbc   :  { %v187_v61 = vmul.f32 %v1276_v46, %v156_v41  ;;  %v292_v24 = vmul.f32 %v1288_v58, %v264_v42 }
  0xc0   :  { %v86_v48 = vpop.permute.xlu0 %85  ;;  %v204_v50 = vpop.permute.xlu1 %203 }
  0xc1   :  { %v127_v52 = vmul.f32 %v1274_v45, %v86_v48  ;;  %v238_v63 = vmul.f32 %v1286_v55, %v204_v50 }
  0xc3   :  { %v142_v53 = vadd.f32 %v1281_v47, %v127_v52 }
  0xc4   :  { %v91_v56 = vpop.permute.xlu0 %90  ;;  %v208_v57 = vpop.permute.xlu1 %207 }
  0xc5   :  { %v128_v59 = vmul.f32 %v1274_v45, %v91_v56  ;;  %v194_v60 = vadd.f32 %v186_v54, %v142_v53  ;;  %v239_v3 = vmul.f32 %v1286_v55, %v208_v57 }
  0xc7   :  { %v143_v62 = vadd.f32 %v1281_v47, %v128_v59  ;;  %v246_v6 = vadd.f32 %v238_v63, %v194_v60 }
  0xc8   :  { %v96_v0 = vpop.permute.xlu0 %95 }
  0xc9   :  { %v195_v2 = vadd.f32 %v187_v61, %v143_v62  ;;  %v256_v4 = vpop.permute.xlu1 %255  ;;  %v129_v16 = vmul.f32 %v1274_v45, %v96_v0 }
  0xca   :  { %v290_v5 = vmul.f32 %v1288_v58, %v256_v4 }
  0xcb   :  { %v247_v7 = vadd.f32 %v239_v3, %v195_v2  ;;  %v144_v20 = vadd.f32 %v1281_v47, %v129_v16 }
  0xcc   :  { %v101_v8 = vpop.permute.xlu0 %100  ;;  %v298_v9 = vadd.f32 %v290_v5, %v246_v6 }
  0xcd   :  { %v299_v10 = vadd.f32 %v291_v1, %v247_v7  ;;  %v130_v30 = vmul.f32 %v1274_v45, %v101_v8 }
  0xce   :  { %v164_v11 = vpop.permute.xlu1 %163  ;;  %v306_v12 = vmax.f32 %v298_v9, 0.0 }
  0xcf   :  { %v307_v13 = vmax.f32 %v299_v10, 0.0  ;;  %v145_v33 = vadd.f32 %v1281_v47, %v130_v30  ;;  %v189_v34 = vmul.f32 %v1276_v46, %v164_v11  ;;  %v501_v30 = vld [vmem:[#allocation5 + $0x18] sm:$0xff] }
  0xd0   :  { %819 = vmatprep.mubr.f32.mxu0 %v306_v12  ;;  %v111_v14 = vpop.permute.xlu0 %110 }
  0xd1   :  { %820 = vmatmul.mubr.f32.vlgmr.msra.gmra.mrb[0].mxu0 %v307_v13  ;;  %v197_v37 = vadd.f32 %v189_v34, %v145_v33  ;;  %v132_v50 = vmul.f32 %v1274_v45, %v111_v14  ;;  %v504_v34 = vld [vmem:[#allocation5 + $0x30] sm:$0xff] }
  0xd3   :  { %v106_v15 = vpop.permute.xlu1 %105  ;;  %v147_v56 = vadd.f32 %v1281_v47, %v132_v50  ;;  %v513_v50 = vld [vmem:[#allocation5 + $0x78] sm:$0xff] }
  0xd4   :  { %v116_v17 = vpop.permute.xlu0 %115  ;;  %v131_v51 = vmul.f32 %v1274_v45, %v106_v15 }
  0xd5   :  { %v133_v18 = vmul.f32 %v1274_v45, %v116_v17 }
  0xd6   :  { %v146_v57 = vadd.f32 %v1281_v47, %v131_v51 }
  0xd7   :  { %v148_v19 = vadd.f32 %v1281_v47, %v133_v18 }
  0xd8   :  { %v212_v21 = vpop.permute.xlu1 %211 }
  0xd9   :  { %v160_v22 = vpop.permute.xlu0 %159  ;;  %v240_v25 = vmul.f32 %v1286_v55, %v212_v21 }
  0xda   :  { %v188_v23 = vmul.f32 %v1276_v46, %v160_v22 }
  0xdc   :  { %v196_v26 = vadd.f32 %v188_v23, %v144_v20  ;;  %v216_v27 = vpop.permute.xlu1 %215 }
  0xdd   :  { %v241_v36 = vmul.f32 %v1286_v55, %v216_v27  ;;  %v180_v49 = vpop.permute.xlu0 %179  ;;  %v498_v27 = vld [vmem:[#allocation5] sm:$0xff] }
  0xde   :  { %v248_v28 = vadd.f32 %v240_v25, %v196_v26  ;;  %v193_v11 = vmul.f32 %v1276_v46, %v180_v49  ;;  %v512_v49 = vld [vmem:[#allocation5 + $0x70] sm:$0xff] }
  0xdf   :  { %v249_v39 = vadd.f32 %v241_v36, %v197_v37  ;;  %v506_v37 = vld [vmem:[#allocation5 + $0x40] sm:$0xff]  ;;  %v955_v51 = vpack.c.bf16 %v513_v50, %v512_v49 }
  0xe0   :  { %v300_v29 = vadd.f32 %v292_v24, %v248_v28  ;;  %v499_v28 = vld [vmem:[#allocation5 + $0x8] sm:$0xff] }
  0xe1   :  { %v168_v31 = vpop.permute.xlu1 %167 }
  0xe2   :  { %v308_v32 = vmax.f32 %v300_v29, 0.0  ;;  %v190_v53 = vmul.f32 %v1276_v46, %v168_v31  ;;  %v224_v61 = vpop.permute.xlu0 %223  ;;  %v1116_v29 = vmov 0.0|0.0  }
  0xe3   :  { %v243_v1 = vmul.f32 %v1286_v55, %v224_v61  ;;  %933 = vmatprep.subr.bf16.mxu1 %v1116_v29  ;;  %957 = vmatprep.subr.bf16.mxu0 %v1116_v29  ;;  %v619_v61 = vld [vmem:[#allocation7 + $0x20] sm:$0xff] }
  0xe4   :  { %822 = vmatprep.mubr.f32.mxu0 %v308_v32  ;;  %v198_v62 = vadd.f32 %v190_v53, %v146_v57  ;;  %v503_v32 = vld [vmem:[#allocation5 + $0x28] sm:$0xff]  ;;  %v615_v53 = vld [vmem:[#allocation7] sm:$0xff] }
  0xe5   :  { %v172_v35 = vpop.permute.xlu1 %171 }
  0xe6   :  { %v191_v59 = vmul.f32 %v1276_v46, %v172_v35  ;;  %v232_v13 = vpop.permute.xlu0 %231  ;;  %v505_v35 = vld [vmem:[#allocation5 + $0x38] sm:$0xff] }
  0xe7   :  { %v245_v17 = vmul.f32 %v1286_v55, %v232_v13  ;;  %v943_v36 = vpack.c.bf16 %v505_v35, %v504_v34 }
  0xe8   :  { %v199_v0 = vadd.f32 %v191_v59, %v147_v56  ;;  %v617_v56 = vld [vmem:[#allocation7 + $0x10] sm:$0xff]  ;;  %v618_v59 = vld [vmem:[#allocation7 + $0x18] sm:$0xff] }
  0xea   :  { %v268_v38 = vpop.permute.xlu1 %267  ;;  %v251_v5 = vadd.f32 %v243_v1, %v199_v0  ;;  %v621_v0 = vld [vmem:[#allocation7 + $0x30] sm:$0xff]  ;;  %v622_v1 = vld [vmem:[#allocation7 + $0x38] sm:$0xff] }
  0xeb   :  { %v293_v40 = vmul.f32 %v1288_v58, %v268_v38  ;;  %v507_v38 = vld [vmem:[#allocation5 + $0x48] sm:$0xff] }
  0xed   :  { %v301_v41 = vadd.f32 %v293_v40, %v249_v39  ;;  %v946_v39 = vpack.c.bf16 %v507_v38, %v506_v37  ;;  %v508_v40 = vld [vmem:[#allocation5 + $0x50] sm:$0xff] }
  0xef   :  { %v309_v42 = vmax.f32 %v301_v41, 0.0  ;;  %v220_v43 = vpop.permute.xlu1 %219  ;;  %v509_v41 = vld [vmem:[#allocation5 + $0x58] sm:$0xff] }
  0xf0   :  { %v242_v60 = vmul.f32 %v1286_v55, %v220_v43  ;;  %v510_v43 = vld [vmem:[#allocation5 + $0x60] sm:$0xff] }
  0xf1   :  { %823 = vmatmul.mubr.f32.gmra.mrb[2].mxu0 %v309_v42  ;;  %v949_v42 = vpack.c.bf16 %v509_v41, %v508_v40 }
  0xf4   :  { %v121_v44 = vpop.permute.xlu1 %120 }
  0xf5   :  { %v134_v48 = vmul.f32 %v1274_v45, %v121_v44  ;;  %v250_v45 = vadd.f32 %v242_v60, %v198_v62  ;;  %v511_v44 = vld [vmem:[#allocation5 + $0x68] sm:$0xff]  ;;  %v961_v60 = vpack.c.bf16 %v618_v59, %v617_v56 }
  0xf6   :  { %v620_v62 = vld [vmem:[#allocation7 + $0x28] sm:$0xff] }
  0xf7   :  { %v149_v52 = vadd.f32 %v1281_v47, %v134_v48  ;;  %v952_v48 = vpack.c.bf16 %v511_v44, %v510_v43 }
  0xf9   :  { %v176_v54 = vpop.permute.xlu1 %175  ;;  %v201_v16 = vadd.f32 %v193_v11, %v149_v52  ;;  %v1118_v52 = vmov 0.0  }
  0xfa   :  { %v192_v8 = vmul.f32 %v1276_v46, %v176_v54  ;;  %863 = vmatprep.mubr.msk.f32.mxu1 %vm1117_vm0, %v1118_v52  ;;  %v616_v54 = vld [vmem:[#allocation7 + $0x8] sm:$0xff] }
  0xfb   :  { %v253_v23 = vadd.f32 %v245_v17, %v201_v16  ;;  %v958_v57 = vpack.c.bf16 %v616_v54, %v615_v53 }
  0xfc   :  { %v200_v14 = vadd.f32 %v192_v8, %v148_v19  ;;  %v934_v19 = vpack.c.bf16 %v499_v28, %v498_v27  ;;  %v628_v8 = vld [vmem:[#allocation7 + $0x68] sm:$0xff] }
  0xfd   :  { %959 = vmatpush3.bf16.msra.mxu0 %v958_v57 }
  0xfe   :  { %v272_v63 = vpop.permute.xlu1 %271  ;;  %935 = vmatpush3.bf16.msra.mxu1 %v934_v19  ;;  %960 = vmatprep.subr.bf16.mxu0 %v1116_v29 }
  0xff   :  { %v294_v2 = vmul.f32 %v1288_v58, %v272_v63  ;;  %936 = vmatprep.subr.bf16.mxu1 %v1116_v29  ;;  %v964_v63 = vpack.c.bf16 %v620_v62, %v619_v61 }
 0x101   :  { %v302_v3 = vadd.f32 %v294_v2, %v250_v45  ;;  %962 = vmatpush3.bf16.msra.mxu0 %v961_v60  ;;  %v967_v45 = vpack.c.bf16 %v622_v1, %v621_v0  ;;  %v623_v2 = vld [vmem:[#allocation7 + $0x40] sm:$0xff] }
 0x102   :  { %v276_v4 = vpop.permute.xlu1 %275  ;;  %963 = vmatprep.subr.bf16.mxu0 %v1116_v29 }
 0x103   :  { %v310_v6 = vmax.f32 %v302_v3, 0.0  ;;  %v295_v7 = vmul.f32 %v1288_v58, %v276_v4  ;;  %v624_v3 = vld [vmem:[#allocation7 + $0x48] sm:$0xff] }
 0x104   :  { %v970_v4 = vpack.c.bf16 %v624_v3, %v623_v2 }
 0x105   :  { %v303_v47 = vadd.f32 %v295_v7, %v251_v5  ;;  %825 = vmatprep.mubr.f32.mxu0 %v310_v6  ;;  %965 = vmatpush3.bf16.msra.mxu0 %v964_v63  ;;  %v625_v5 = vld [vmem:[#allocation7 + $0x50] sm:$0xff]  ;;  %v626_v6 = vld [vmem:[#allocation7 + $0x58] sm:$0xff] }
 0x106   :  { %966 = vmatprep.subr.bf16.mxu0 %v1116_v29  ;;  %v973_v7 = vpack.c.bf16 %v626_v6, %v625_v5 }
 0x107   :  { %v311_v9 = vmax.f32 %v303_v47, 0.0  ;;  %v228_v10 = vpop.permute.xlu1 %227  ;;  %v627_v47 = vld [vmem:[#allocation7 + $0x60] sm:$0xff] }
 0x108   :  { %v244_v12 = vmul.f32 %v1286_v55, %v228_v10  ;;  %v500_v55 = vld [vmem:[#allocation5 + $0x10] sm:$0xff]  ;;  %v1346_v10 = vld [vmem:[%s1378_s4] ss:$0 sm:$0xff] }
 0x109   :  { %826 = vmatmul.mubr.f32.gmra.mrb[4].mxu0 %v311_v9  ;;  %v937_v31 = vpack.c.bf16 %v501_v30, %v500_v55  ;;  %v976_v9 = vpack.c.bf16 %v628_v8, %v627_v47 }
 0x10a   :  { %v252_v18 = vadd.f32 %v244_v12, %v200_v14  ;;  %968 = vmatpush3.bf16.msra.mxu0 %v967_v45 }
 0x10b   :  { %938 = vmatpush3.bf16.msra.mxu1 %v937_v31  ;;  %969 = vmatprep.subr.bf16.mxu0 %v1116_v29 }
 0x10c   :  { %v280_v15 = vpop.permute.xlu1 %279  ;;  %939 = vmatprep.subr.bf16.mxu1 %v1116_v29 }
 0x10d   :  { %v296_v20 = vmul.f32 %v1288_v58, %v280_v15 }
 0x10e   :  { %971 = vmatpush3.bf16.msra.mxu0 %v970_v4 }
 0x10f   :  { %v304_v21 = vadd.f32 %v296_v20, %v252_v18  ;;  %972 = vmatprep.subr.bf16.mxu0 %v1116_v29 }
 0x110   :  { %v284_v22 = vpop.permute.xlu1 %283 }
 0x111   :  { %v312_v24 = vmax.f32 %v304_v21, 0.0  ;;  %v297_v25 = vmul.f32 %v1288_v58, %v284_v22  ;;  %v502_v58 = vld [vmem:[#allocation5 + $0x20] sm:$0xff] }
 0x112   :  { %v940_v33 = vpack.c.bf16 %v503_v32, %v502_v58  ;;  %974 = vmatpush3.bf16.msra.mxu0 %v973_v7 }
 0x113   :  { %v305_v26 = vadd.f32 %v297_v25, %v253_v23  ;;  %828 = vmatprep.mubr.f32.mxu0 %v312_v24  ;;  %975 = vmatprep.subr.bf16.mxu0 %v1116_v29 }
 0x114   :  { %941 = vmatpush3.bf16.msra.mxu1 %v940_v33 }
 0x115   :  { %v313_v46 = vmax.f32 %v305_v26, 0.0  ;;  %942 = vmatprep.subr.bf16.mxu1 %v1116_v29 }
 0x116   :  { %977 = vmatpush3.bf16.msra.mxu0 %v976_v9 }
 0x117   :  { %829 = vmatmul.mubr.f32.gmra.mrb[6].mxu0 %v313_v46  ;;  %978 = vmatprep.subr.bf16.mxu0 %v1116_v29 }
 0x118   :  { %944 = vmatpush3.bf16.msra.mxu1 %v943_v36  ;;  %898 = vmatprep.mubr.msk.f32.mxu0 %vm1117_vm0, %v1118_v52 }
 0x119   :  { %945 = vmatprep.subr.bf16.mxu1 %v1116_v29 }
 0x11c   :  { %947 = vmatpush3.bf16.msra.mxu1 %v946_v39 }
 0x11d   :  { %948 = vmatprep.subr.bf16.mxu1 %v1116_v29 }
 0x120   :  { %950 = vmatpush3.bf16.msra.mxu1 %v949_v42 }
 0x121   :  { %951 = vmatprep.subr.bf16.mxu1 %v1116_v29 }
 0x124   :  { %953 = vmatpush3.bf16.msra.mxu1 %v952_v48 }
 0x125   :  { %954 = vmatprep.subr.bf16.mxu1 %v1116_v29 }
 0x128   :  { %956 = vmatpush3.bf16.msra.mxu1 %v955_v51 }
 0x1a4   :  { %v821_v11 = vpop.f32.mrb[0].mxu0 }
 0x1a5   :  { %v409_v12 = vadd.f32 %v821_v11, %v1346_v10  ;;  %v403_v13 = vpop.f32.mrb[1].mxu0 }
 0x1a6   :  { %v404_v14 = vadd.f32 %v1346_v10, %v403_v13 }
 0x1a7   :  { %v443_v15 = vmax.f32 %v409_v12, 0.0 }
 0x1a8   :  { %v442_v16 = vmax.f32 %v404_v14, 0.0 }
 0x1a9   :  { %v456_v17 = vrot.slane %v443_v15, 4 }
 0x1aa   :  { %v450_v18 = vrot.slane %v442_v16, 4 }
 0x1ab   :  { %v457_v20 = vadd.f32 %v456_v17, %v443_v15 }
 0x1ac   :  { %v451_v21 = vadd.f32 %v450_v18, %v442_v16 }
 0x1ad   :  { %v458_v22 = vrot.slane %v457_v20, 2 }
 0x1ae   :  { %v452_v23 = vrot.slane %v451_v21, 2 }
 0x1af   :  { %v459_v24 = vadd.f32 %v458_v22, %v457_v20 }
 0x1b0   :  { %v453_v25 = vadd.f32 %v452_v23, %v451_v21 }
 0x1b1   :  { %v460_v26 = vrot.slane %v459_v24, 1 }
 0x1b2   :  { %v454_v46 = vrot.slane %v453_v25, 1 }
 0x1b3   :  { %v461_v27 = vadd.f32 %v460_v26, %v459_v24 }
 0x1b4   :  { %v455_v28 = vadd.f32 %v454_v46, %v453_v25  ;;  %v629_v46 = vld [vmem:[#allocation7 + $0x70] sm:$0xff] }
 0x1b6   :  { %v530_v19 = vsel %vm529_vm1, %v461_v27, %v455_v28  ;;  %v630_v27 = vld [vmem:[#allocation7 + $0x78] sm:$0xff] }
 0x1b7   :  { %v979_v28 = vpack.c.bf16 %v630_v27, %v629_v46 }
 0x1b9   :  { %980 = vmatpush3.bf16.msra.mxu0 %v979_v28 }
 0x1c4   :  { %v824_v29 = vpop.f32.mrb[2].mxu0 }
 0x1c5   :  { %v419_v55 = vadd.f32 %v824_v29, %v1346_v10  ;;  %v413_v30 = vpop.f32.mrb[3].mxu0 }
 0x1c6   :  { %v414_v31 = vadd.f32 %v1346_v10, %v413_v30 }
 0x1c7   :  { %v445_v58 = vmax.f32 %v419_v55, 0.0 }
 0x1c8   :  { %v444_v32 = vmax.f32 %v414_v31, 0.0 }
 0x1c9   :  { %v468_v33 = vrot.slane %v445_v58, 4 }
 0x1ca   :  { %v462_v34 = vrot.slane %v444_v32, 4 }
 0x1cb   :  { %v469_v35 = vadd.f32 %v468_v33, %v445_v58  ;;  %v728_v58 = vld [vmem:[%s1382_s8] ss:$0 sm:$0xff] }
 0x1cc   :  { %v463_v36 = vadd.f32 %v462_v34, %v444_v32 }
 0x1cd   :  { %v470_v37 = vrot.slane %v469_v35, 2 }
 0x1ce   :  { %v464_v38 = vrot.slane %v463_v36, 2 }
 0x1cf   :  { %v471_v39 = vadd.f32 %v470_v37, %v469_v35 }
 0x1d0   :  { %v465_v40 = vadd.f32 %v464_v38, %v463_v36 }
 0x1d1   :  { %v472_v41 = vrot.slane %v471_v39, 1 }
 0x1d2   :  { %v466_v42 = vrot.slane %v465_v40, 1 }
 0x1d3   :  { %v473_v44 = vadd.f32 %v472_v41, %v471_v39 }
 0x1d4   :  { %v467_v43 = vadd.f32 %v466_v42, %v465_v40 }
 0x1d6   :  { %v532_v48 = vsel %vm531_vm2, %v467_v43, %v530_v19  ;;  %v727_v19 = vld [vmem:[%s1380_s6] ss:$0 sm:$0xff] }
 0x1d7   :  { %v534_v49 = vsel %vm533_vm3, %v473_v44, %v532_v48 }
 0x1dc   :  { %v827_v50 = vpop.f32.mrb[4].mxu0 }
 0x1dd   :  { %v429_v51 = vadd.f32 %v827_v50, %v1346_v10  ;;  %v423_v52 = vpop.f32.mrb[5].mxu0 }
 0x1de   :  { %v424_v53 = vadd.f32 %v1346_v10, %v423_v52 }
 0x1df   :  { %v447_v54 = vmax.f32 %v429_v51, 0.0 }
 0x1e0   :  { %v446_v56 = vmax.f32 %v424_v53, 0.0 }
 0x1e1   :  { %v480_v57 = vrot.slane %v447_v54, 4 }
 0x1e2   :  { %v474_v59 = vrot.slane %v446_v56, 4 }
 0x1e3   :  { %v481_v60 = vadd.f32 %v480_v57, %v447_v54 }
 0x1e4   :  { %v475_v61 = vadd.f32 %v474_v59, %v446_v56 }
 0x1e5   :  { %v482_v62 = vrot.slane %v481_v60, 2 }
 0x1e6   :  { %v476_v63 = vrot.slane %v475_v61, 2 }
 0x1e7   :  { %v483_v0 = vadd.f32 %v482_v62, %v481_v60 }
 0x1e8   :  { %v477_v1 = vadd.f32 %v476_v63, %v475_v61 }
 0x1e9   :  { %v484_v45 = vrot.slane %v483_v0, 1 }
 0x1ea   :  { %v478_v2 = vrot.slane %v477_v1, 1  ;;  %v830_v3 = vpop.f32.mrb[6].mxu0 }
 0x1eb   :  { %v439_v4 = vadd.f32 %v830_v3, %v1346_v10  ;;  %v433_v5 = vpop.f32.mrb[7].mxu0  ;;  %v485_v47 = vadd.f32 %v484_v45, %v483_v0 }
 0x1ec   :  { %v479_v6 = vadd.f32 %v478_v2, %v477_v1  ;;  %v434_v7 = vadd.f32 %v1346_v10, %v433_v5 }
 0x1ed   :  { %v449_v8 = vmax.f32 %v439_v4, 0.0 }
 0x1ee   :  { %v448_v9 = vmax.f32 %v434_v7, 0.0  ;;  %v536_v11 = vsel %vm535_vm4, %v479_v6, %v534_v49 }
 0x1ef   :  { %v492_v12 = vrot.slane %v449_v8, 4  ;;  %v538_v13 = vsel %vm537_vm5, %v485_v47, %v536_v11 }
 0x1f0   :  { %v486_v14 = vrot.slane %v448_v9, 4 }
 0x1f1   :  { %v493_v15 = vadd.f32 %v492_v12, %v449_v8 }
 0x1f2   :  { %v487_v16 = vadd.f32 %v486_v14, %v448_v9 }
 0x1f3   :  { %v494_v17 = vrot.slane %v493_v15, 2 }
 0x1f4   :  { %v488_v18 = vrot.slane %v487_v16, 2 }
 0x1f5   :  { %v495_v20 = vadd.f32 %v494_v17, %v493_v15 }
 0x1f6   :  { %v489_v21 = vadd.f32 %v488_v18, %v487_v16 }
 0x1f7   :  { %v496_v22 = vrot.slane %v495_v20, 1 }
 0x1f8   :  { %v490_v23 = vrot.slane %v489_v21, 1 }
 0x1f9   :  { %v497_v10 = vadd.f32 %v496_v22, %v495_v20 }
 0x1fa   :  { %v491_v24 = vadd.f32 %v490_v23, %v489_v21 }
 0x1fc   :  { %v540_v25 = vsel %vm539_vm6, %v491_v24, %v538_v13 }
 0x1fd   :  { %v542_v26 = vsel %vm541_vm7, %v497_v10, %v540_v25 }
 0x1fe   :  { %864 = vmatmul.mubr.f32.vlgmr.msra.gmra.mrb[0].mxu1 %v542_v26 }
 0x2d1   :  { %v610_v29 = vpop.f32.mrb[0].mxu1 }
 0x2d2   :  { %v611_v55 = vadd.f32 %v727_v19, %v610_v29  ;;  %v865_v30 = vpop.f32.mrb[1].mxu1 }
 0x2d4   :  { %v614_v31 = vmax.f32 %v611_v55, 0.0 }
 0x2d6   :  { %899 = vmatmul.mubr.f32.vlgmr.msra.gmra.mrb[8].mxu0 %v614_v31 }
 0x3a9   :  { %v704_v32 = vpop.f32.mrb[8].mxu0 }
 0x3aa   :  { %v705_v33 = vadd.f32 %v728_v58, %v704_v32  ;;  %v900_v34 = vpop.f32.mrb[9].mxu0 }
 0x3ac   :  { %708 = vst [vmem:[#allocation8] sm:$0xff] %v705_v33 }
 0x3ad   :  { %1090 = shalt.err (!%p1087_p0)
}
 0x3ae   :  { %s1091_s28 = scalar_lea.hbm %s1383_s9, 128 }
 0x3af   :  { %p1092_p1 = scmp.ne.s32.totalorder %s1383_s9, %s1091_s28  ;;  %p1095_p2 = scmp.lt.u32.totalorder %s1091_s28, %s1383_s9 }
 0x3b1   :  { %p1097_p3 = pnand %p1095_p2, %p1092_p1 }
 0x3b3   :  { %1100 = shalt.err (!%p1097_p3)
}
 0x3b4   :  { %718 = dma.vmem_to_hbm [thread:$0]  %s716_s12, 128, %s1383_s9, [#allocation4]  }
 0x3b5   :  { %1105 = dma.done.wait [#allocation4], 128  }
 0x3b6   :  { %1106 = vsyncadd [#allocation4], 4294967168 }
 0x3b7   :  { %722 = vsyncpa [#allocation3], 1 }
 0x3b8   :  { %723 = vsyncpa [#allocation6], 1 }
 0x3b9   :  { %724 = vsyncpa [#allocation4], 1 }

</bundles_post_ra>
